<compile_context>
chip_gen: v5e
topology: v5e:2x2
jax: 0.10.0
libtpu: 0.0.40
codegen_flags: <defaults>
</compile_context>

<pallas_src>
import functools

import jax
import jax.numpy as jnp
from jax import lax
from jax.experimental import pallas as pl
from jax.experimental.pallas import tpu as pltpu


def _resblock_kernel(x_ref, p_ref, o_ref, *, C, Hd, chunk_r, n_chunks):
    """x_ref: (C, tile_r, 128) VMEM; p_ref: packed params (SMEM); o_ref: (tile_r, 128)."""
    # Packed parameter table layout (row-major):
    #   w1 (C*Hd) | b1 (Hd) | w2o (Hd) | wx (C) | b_eff (1)
    o_w1 = 0
    o_b1 = o_w1 + C * Hd
    o_w2o = o_b1 + Hd
    o_wx = o_w2o + Hd
    o_be = o_wx + C

    # Read every scalar weight once from SMEM (reused across all chunks).
    w1 = [[p_ref[o_w1 + c * Hd + j] for j in range(Hd)] for c in range(C)]
    b1 = [p_ref[o_b1 + j] for j in range(Hd)]
    w2o = [p_ref[o_w2o + j] for j in range(Hd)]
    wx = [p_ref[o_wx + c] for c in range(C)]
    b_eff = p_ref[o_be]

    def body(s, carry):
        r0 = pl.multiple_of(s * chunk_r, chunk_r)
        rows = pl.ds(r0, chunk_r)
        # Load the x chunk at point of use; keep everything in vregs.
        xs = [x_ref[c, rows, :].astype(jnp.float32) for c in range(C)]

        # Residual path folded with conv_out:  b_eff + sum_c wo[c] * x_c
        out = xs[0] * wx[0] + b_eff
        for c in range(1, C):
            out = out + xs[c] * wx[c]

        # conv1 + ReLU, folded conv2@conv_out:  + sum_j w2o[j] * relu(conv1_j)
        for j in range(Hd):
            acc = xs[0] * w1[0][j] + b1[j]
            for c in range(1, C):
                acc = acc + xs[c] * w1[c][j]
            out = out + jnp.maximum(acc, 0.0) * w2o[j]

        o_ref[rows, :] = out.astype(o_ref.dtype)
        return carry

    lax.fori_loop(0, n_chunks, body, 0)


def residual_block_forward(x_ncdhw, params, *, tile_voxels=131072):
    """x_ncdhw: (N, C, D, H, W) float32. Returns (N, D, H, W)."""
    w1, b1, w2, b2, wo, bo = params
    N, C, D, H, W = x_ncdhw.shape
    Hd = w1.shape[1]
    V = D * H * W

    # NCDHW -> (N, C, V): voxels flatten onto the fast axis, no transpose.
    x3d = x_ncdhw.reshape(N, C, V)

    # Voxel tiling: tile_r rows of 128 lanes per grid step (sublane+lane dense),
    # chunked inside the kernel into register-resident (chunk_r, 128) slabs.
    R = pl.cdiv(V, 128)
    want_r = max(8, tile_voxels // 128)
    tile_r = min(want_r, pl.cdiv(R, 8) * 8)
    tile_r = max(8, pl.cdiv(tile_r, 8) * 8)
    chunk_r = min(64, tile_r)
    tile_r = pl.cdiv(tile_r, chunk_r) * chunk_r
    n_chunks = tile_r // chunk_r

    Rp = pl.cdiv(R, tile_r) * tile_r
    Vp = Rp * 128
    if Vp != V:
        x3d = jnp.pad(x3d, ((0, 0), (0, 0), (0, Vp - V)))
    x4d = x3d.reshape(N, C, Rp, 128)

    # Fold conv_out (and b2, bo) into the weights ahead of time:
    #   out = b_eff + sum_c wo[c]*x_c + sum_j w2o[j]*relu(conv1_j(x))
    w2o = w2 @ wo                           # (Hd,)
    b_eff = bo + jnp.dot(b2, wo)            # (1,)
    packed = jnp.concatenate([
        w1.reshape(-1), b1.reshape(-1), w2o.reshape(-1),
        wo.reshape(-1), b_eff.reshape(-1),
    ]).astype(jnp.float32)

    kernel = functools.partial(
        _resblock_kernel, C=C, Hd=Hd, chunk_r=chunk_r, n_chunks=n_chunks)

    grid = (N, Rp // tile_r)
    out = pl.pallas_call(
        kernel,
        out_shape=jax.ShapeDtypeStruct((N, Rp, 128), x_ncdhw.dtype),
        grid_spec=pltpu.PrefetchScalarGridSpec(
            num_scalar_prefetch=0,
            grid=grid,
            in_specs=[
                # (C, tile_r, 128) voxel slab per step; N squeezed out.
                pl.BlockSpec((None, C, tile_r, 128), lambda n, r: (n, 0, r, 0)),
                # Packed weights/biases: whole array in SMEM, read as scalars.
                pl.BlockSpec(memory_space=pltpu.MemorySpace.SMEM),
            ],
            # Lane-dense output block (tile_r, 128): unmasked vector stores.
            out_specs=pl.BlockSpec((None, tile_r, 128), lambda n, r: (n, r, 0)),
        ),
        compiler_params=pltpu.CompilerParams(
            dimension_semantics=("parallel", "parallel")),
    )(x4d, packed)

    return out.reshape(N, Vp)[:, :V].reshape(N, D, H, W)


def init_params(key, d_model, hidden_dim):
    """Deterministic synthetic weights (Conv3d k=1 layers, stored (in, out))."""
    k1, k2, k3, k4, k5, k6 = jax.random.split(key, 6)
    w1 = jax.random.normal(k1, (d_model, hidden_dim), jnp.float32) * 0.1
    b1 = jax.random.normal(k2, (hidden_dim,), jnp.float32) * 0.1
    w2 = jax.random.normal(k3, (hidden_dim, d_model), jnp.float32) * 0.1
    b2 = jax.random.normal(k4, (d_model,), jnp.float32) * 0.1
    wo = jax.random.normal(k5, (d_model,), jnp.float32) * 0.1
    bo = jax.random.normal(k6, (1,), jnp.float32) * 0.1
    return w1, b1, w2, b2, wo, bo


def reference_forward(x_ncdhw, params):
    """Plain-JAX reference matching the PyTorch module semantics."""
    w1, b1, w2, b2, wo, bo = params
    xc = jnp.transpose(x_ncdhw, (0, 2, 3, 4, 1))                # (N,D,H,W,C)
    h = jnp.maximum(xc @ w1 + b1, 0.0)
    y = h @ w2 + b2 + xc
    o = y @ wo[:, None] + bo                                     # (N,D,H,W,1)
    return o[..., 0]                                             # squeeze(1) equiv


if __name__ == "__main__":
    d_model, hidden_dim = 4, 8
    N, D, H, W = 2, 8, 8, 8

    key = jax.random.PRNGKey(0)
    kx, kp = jax.random.split(key)
    x = jax.random.normal(kx, (N, d_model, D, H, W), jnp.float32)
    params = init_params(kp, d_model, hidden_dim)

    out = jax.block_until_ready(residual_block_forward(x, params))

    ref = reference_forward(x, params)
    assert out.shape == (N, D, H, W), out.shape
    assert jnp.allclose(out, ref, atol=1e-5, rtol=1e-5), "mismatch vs reference"

    print("KERNEL_OK")
</pallas_src>

<mosaic_0001>
module attributes {stable_mosaic.version = 11 : i64} {
  func.func @_resblock_kernel(%arg0: i32, %arg1: i32, %arg2: memref<1x4x8x128xf32, #tpu.memory_space<vmem>>, %arg3: memref<53xf32, #tpu.memory_space<smem>>, %arg4: memref<1x8x128xf32, #tpu.memory_space<vmem>>) attributes {dimension_semantics = [#tpu.dimension_semantics<parallel>, #tpu.dimension_semantics<parallel>], iteration_bounds = array<i64: 2, 1>, scalar_prefetch = 0 : i64, scratch_operands = 0 : i64, tpu.core_type = #tpu.core_type<tc>, window_params = [{transform_indices = @transform_0, window_bounds = array<i64: 1, 4, 8, 128>}, {transform_indices = @transform_1, window_bounds = array<i64: 53>}, {transform_indices = @transform_2, window_bounds = array<i64: 1, 8, 128>}]} {
    %c0 = arith.constant 0 : index
    %0 = memref.load %arg3[%c0] : memref<53xf32, #tpu.memory_space<smem>>
    %c1 = arith.constant 1 : index
    %1 = memref.load %arg3[%c1] : memref<53xf32, #tpu.memory_space<smem>>
    %c2 = arith.constant 2 : index
    %2 = memref.load %arg3[%c2] : memref<53xf32, #tpu.memory_space<smem>>
    %c3 = arith.constant 3 : index
    %3 = memref.load %arg3[%c3] : memref<53xf32, #tpu.memory_space<smem>>
    %c4 = arith.constant 4 : index
    %4 = memref.load %arg3[%c4] : memref<53xf32, #tpu.memory_space<smem>>
    %c5 = arith.constant 5 : index
    %5 = memref.load %arg3[%c5] : memref<53xf32, #tpu.memory_space<smem>>
    %c6 = arith.constant 6 : index
    %6 = memref.load %arg3[%c6] : memref<53xf32, #tpu.memory_space<smem>>
    %c7 = arith.constant 7 : index
    %7 = memref.load %arg3[%c7] : memref<53xf32, #tpu.memory_space<smem>>
    %c8 = arith.constant 8 : index
    %8 = memref.load %arg3[%c8] : memref<53xf32, #tpu.memory_space<smem>>
    %c9 = arith.constant 9 : index
    %9 = memref.load %arg3[%c9] : memref<53xf32, #tpu.memory_space<smem>>
    %c10 = arith.constant 10 : index
    %10 = memref.load %arg3[%c10] : memref<53xf32, #tpu.memory_space<smem>>
    %c11 = arith.constant 11 : index
    %11 = memref.load %arg3[%c11] : memref<53xf32, #tpu.memory_space<smem>>
    %c12 = arith.constant 12 : index
    %12 = memref.load %arg3[%c12] : memref<53xf32, #tpu.memory_space<smem>>
    %c13 = arith.constant 13 : index
    %13 = memref.load %arg3[%c13] : memref<53xf32, #tpu.memory_space<smem>>
    %c14 = arith.constant 14 : index
    %14 = memref.load %arg3[%c14] : memref<53xf32, #tpu.memory_space<smem>>
    %c15 = arith.constant 15 : index
    %15 = memref.load %arg3[%c15] : memref<53xf32, #tpu.memory_space<smem>>
    %c16 = arith.constant 16 : index
    %16 = memref.load %arg3[%c16] : memref<53xf32, #tpu.memory_space<smem>>
    %c17 = arith.constant 17 : index
    %17 = memref.load %arg3[%c17] : memref<53xf32, #tpu.memory_space<smem>>
    %c18 = arith.constant 18 : index
    %18 = memref.load %arg3[%c18] : memref<53xf32, #tpu.memory_space<smem>>
    %c19 = arith.constant 19 : index
    %19 = memref.load %arg3[%c19] : memref<53xf32, #tpu.memory_space<smem>>
    %c20 = arith.constant 20 : index
    %20 = memref.load %arg3[%c20] : memref<53xf32, #tpu.memory_space<smem>>
    %c21 = arith.constant 21 : index
    %21 = memref.load %arg3[%c21] : memref<53xf32, #tpu.memory_space<smem>>
    %c22 = arith.constant 22 : index
    %22 = memref.load %arg3[%c22] : memref<53xf32, #tpu.memory_space<smem>>
    %c23 = arith.constant 23 : index
    %23 = memref.load %arg3[%c23] : memref<53xf32, #tpu.memory_space<smem>>
    %c24 = arith.constant 24 : index
    %24 = memref.load %arg3[%c24] : memref<53xf32, #tpu.memory_space<smem>>
    %c25 = arith.constant 25 : index
    %25 = memref.load %arg3[%c25] : memref<53xf32, #tpu.memory_space<smem>>
    %c26 = arith.constant 26 : index
    %26 = memref.load %arg3[%c26] : memref<53xf32, #tpu.memory_space<smem>>
    %c27 = arith.constant 27 : index
    %27 = memref.load %arg3[%c27] : memref<53xf32, #tpu.memory_space<smem>>
    %c28 = arith.constant 28 : index
    %28 = memref.load %arg3[%c28] : memref<53xf32, #tpu.memory_space<smem>>
    %c29 = arith.constant 29 : index
    %29 = memref.load %arg3[%c29] : memref<53xf32, #tpu.memory_space<smem>>
    %c30 = arith.constant 30 : index
    %30 = memref.load %arg3[%c30] : memref<53xf32, #tpu.memory_space<smem>>
    %c31 = arith.constant 31 : index
    %31 = memref.load %arg3[%c31] : memref<53xf32, #tpu.memory_space<smem>>
    %c32 = arith.constant 32 : index
    %32 = memref.load %arg3[%c32] : memref<53xf32, #tpu.memory_space<smem>>
    %c33 = arith.constant 33 : index
    %33 = memref.load %arg3[%c33] : memref<53xf32, #tpu.memory_space<smem>>
    %c34 = arith.constant 34 : index
    %34 = memref.load %arg3[%c34] : memref<53xf32, #tpu.memory_space<smem>>
    %c35 = arith.constant 35 : index
    %35 = memref.load %arg3[%c35] : memref<53xf32, #tpu.memory_space<smem>>
    %c36 = arith.constant 36 : index
    %36 = memref.load %arg3[%c36] : memref<53xf32, #tpu.memory_space<smem>>
    %c37 = arith.constant 37 : index
    %37 = memref.load %arg3[%c37] : memref<53xf32, #tpu.memory_space<smem>>
    %c38 = arith.constant 38 : index
    %38 = memref.load %arg3[%c38] : memref<53xf32, #tpu.memory_space<smem>>
    %c39 = arith.constant 39 : index
    %39 = memref.load %arg3[%c39] : memref<53xf32, #tpu.memory_space<smem>>
    %c40 = arith.constant 40 : index
    %40 = memref.load %arg3[%c40] : memref<53xf32, #tpu.memory_space<smem>>
    %c41 = arith.constant 41 : index
    %41 = memref.load %arg3[%c41] : memref<53xf32, #tpu.memory_space<smem>>
    %c42 = arith.constant 42 : index
    %42 = memref.load %arg3[%c42] : memref<53xf32, #tpu.memory_space<smem>>
    %c43 = arith.constant 43 : index
    %43 = memref.load %arg3[%c43] : memref<53xf32, #tpu.memory_space<smem>>
    %c44 = arith.constant 44 : index
    %44 = memref.load %arg3[%c44] : memref<53xf32, #tpu.memory_space<smem>>
    %c45 = arith.constant 45 : index
    %45 = memref.load %arg3[%c45] : memref<53xf32, #tpu.memory_space<smem>>
    %c46 = arith.constant 46 : index
    %46 = memref.load %arg3[%c46] : memref<53xf32, #tpu.memory_space<smem>>
    %c47 = arith.constant 47 : index
    %47 = memref.load %arg3[%c47] : memref<53xf32, #tpu.memory_space<smem>>
    %c48 = arith.constant 48 : index
    %48 = memref.load %arg3[%c48] : memref<53xf32, #tpu.memory_space<smem>>
    %c49 = arith.constant 49 : index
    %49 = memref.load %arg3[%c49] : memref<53xf32, #tpu.memory_space<smem>>
    %c50 = arith.constant 50 : index
    %50 = memref.load %arg3[%c50] : memref<53xf32, #tpu.memory_space<smem>>
    %c51 = arith.constant 51 : index
    %51 = memref.load %arg3[%c51] : memref<53xf32, #tpu.memory_space<smem>>
    %c52 = arith.constant 52 : index
    %52 = memref.load %arg3[%c52] : memref<53xf32, #tpu.memory_space<smem>>
    %c0_i32 = arith.constant 0 : i32
    %c8_i32 = arith.constant 8 : i32
    %53 = arith.muli %c0_i32, %c8_i32 : i32
    %54 = tpu.assume_multiple %53, 8 : i32
    %c0_0 = arith.constant 0 : index
    %c0_1 = arith.constant 0 : index
    %55 = arith.index_cast %54 : i32 to index
    %c0_2 = arith.constant 0 : index
    %56 = vector.load %arg2[%c0_0, %c0_1, %55, %c0_2] : memref<1x4x8x128xf32, #tpu.memory_space<vmem>>, vector<1x1x8x128xf32>
    %57 = vector.shape_cast %56 : vector<1x1x8x128xf32> to vector<8x128xf32>
    %c0_3 = arith.constant 0 : index
    %c1_4 = arith.constant 1 : index
    %58 = arith.index_cast %54 : i32 to index
    %c0_5 = arith.constant 0 : index
    %59 = vector.load %arg2[%c0_3, %c1_4, %58, %c0_5] : memref<1x4x8x128xf32, #tpu.memory_space<vmem>>, vector<1x1x8x128xf32>
    %60 = vector.shape_cast %59 : vector<1x1x8x128xf32> to vector<8x128xf32>
    %c0_6 = arith.constant 0 : index
    %c2_7 = arith.constant 2 : index
    %61 = arith.index_cast %54 : i32 to index
    %c0_8 = arith.constant 0 : index
    %62 = vector.load %arg2[%c0_6, %c2_7, %61, %c0_8] : memref<1x4x8x128xf32, #tpu.memory_space<vmem>>, vector<1x1x8x128xf32>
    %63 = vector.shape_cast %62 : vector<1x1x8x128xf32> to vector<8x128xf32>
    %c0_9 = arith.constant 0 : index
    %c3_10 = arith.constant 3 : index
    %64 = arith.index_cast %54 : i32 to index
    %c0_11 = arith.constant 0 : index
    %65 = vector.load %arg2[%c0_9, %c3_10, %64, %c0_11] : memref<1x4x8x128xf32, #tpu.memory_space<vmem>>, vector<1x1x8x128xf32>
    %66 = vector.shape_cast %65 : vector<1x1x8x128xf32> to vector<8x128xf32>
    %67 = vector.broadcast %48 : f32 to vector<8x128xf32>
    %68 = arith.mulf %57, %67 : vector<8x128xf32>
    %69 = vector.broadcast %52 : f32 to vector<8x128xf32>
    %70 = arith.addf %68, %69 : vector<8x128xf32>
    %71 = vector.broadcast %49 : f32 to vector<8x128xf32>
    %72 = arith.mulf %60, %71 : vector<8x128xf32>
    %73 = arith.addf %70, %72 : vector<8x128xf32>
    %74 = vector.broadcast %50 : f32 to vector<8x128xf32>
    %75 = arith.mulf %63, %74 : vector<8x128xf32>
    %76 = arith.addf %73, %75 : vector<8x128xf32>
    %77 = vector.broadcast %51 : f32 to vector<8x128xf32>
    %78 = arith.mulf %66, %77 : vector<8x128xf32>
    %79 = arith.addf %76, %78 : vector<8x128xf32>
    %80 = vector.broadcast %0 : f32 to vector<8x128xf32>
    %81 = arith.mulf %57, %80 : vector<8x128xf32>
    %82 = vector.broadcast %32 : f32 to vector<8x128xf32>
    %83 = arith.addf %81, %82 : vector<8x128xf32>
    %84 = vector.broadcast %8 : f32 to vector<8x128xf32>
    %85 = arith.mulf %60, %84 : vector<8x128xf32>
    %86 = arith.addf %83, %85 : vector<8x128xf32>
    %87 = vector.broadcast %16 : f32 to vector<8x128xf32>
    %88 = arith.mulf %63, %87 : vector<8x128xf32>
    %89 = arith.addf %86, %88 : vector<8x128xf32>
    %90 = vector.broadcast %24 : f32 to vector<8x128xf32>
    %91 = arith.mulf %66, %90 : vector<8x128xf32>
    %92 = arith.addf %89, %91 : vector<8x128xf32>
    %cst = arith.constant 0.000000e+00 : f32
    %93 = vector.broadcast %cst : f32 to vector<8x128xf32>
    %94 = arith.maximumf %92, %93 : vector<8x128xf32>
    %95 = vector.broadcast %40 : f32 to vector<8x128xf32>
    %96 = arith.mulf %94, %95 : vector<8x128xf32>
    %97 = arith.addf %79, %96 : vector<8x128xf32>
    %98 = vector.broadcast %1 : f32 to vector<8x128xf32>
    %99 = arith.mulf %57, %98 : vector<8x128xf32>
    %100 = vector.broadcast %33 : f32 to vector<8x128xf32>
    %101 = arith.addf %99, %100 : vector<8x128xf32>
    %102 = vector.broadcast %9 : f32 to vector<8x128xf32>
    %103 = arith.mulf %60, %102 : vector<8x128xf32>
    %104 = arith.addf %101, %103 : vector<8x128xf32>
    %105 = vector.broadcast %17 : f32 to vector<8x128xf32>
    %106 = arith.mulf %63, %105 : vector<8x128xf32>
    %107 = arith.addf %104, %106 : vector<8x128xf32>
    %108 = vector.broadcast %25 : f32 to vector<8x128xf32>
    %109 = arith.mulf %66, %108 : vector<8x128xf32>
    %110 = arith.addf %107, %109 : vector<8x128xf32>
    %cst_12 = arith.constant 0.000000e+00 : f32
    %111 = vector.broadcast %cst_12 : f32 to vector<8x128xf32>
    %112 = arith.maximumf %110, %111 : vector<8x128xf32>
    %113 = vector.broadcast %41 : f32 to vector<8x128xf32>
    %114 = arith.mulf %112, %113 : vector<8x128xf32>
    %115 = arith.addf %97, %114 : vector<8x128xf32>
    %116 = vector.broadcast %2 : f32 to vector<8x128xf32>
    %117 = arith.mulf %57, %116 : vector<8x128xf32>
    %118 = vector.broadcast %34 : f32 to vector<8x128xf32>
    %119 = arith.addf %117, %118 : vector<8x128xf32>
    %120 = vector.broadcast %10 : f32 to vector<8x128xf32>
    %121 = arith.mulf %60, %120 : vector<8x128xf32>
    %122 = arith.addf %119, %121 : vector<8x128xf32>
    %123 = vector.broadcast %18 : f32 to vector<8x128xf32>
    %124 = arith.mulf %63, %123 : vector<8x128xf32>
    %125 = arith.addf %122, %124 : vector<8x128xf32>
    %126 = vector.broadcast %26 : f32 to vector<8x128xf32>
    %127 = arith.mulf %66, %126 : vector<8x128xf32>
    %128 = arith.addf %125, %127 : vector<8x128xf32>
    %cst_13 = arith.constant 0.000000e+00 : f32
    %129 = vector.broadcast %cst_13 : f32 to vector<8x128xf32>
    %130 = arith.maximumf %128, %129 : vector<8x128xf32>
    %131 = vector.broadcast %42 : f32 to vector<8x128xf32>
    %132 = arith.mulf %130, %131 : vector<8x128xf32>
    %133 = arith.addf %115, %132 : vector<8x128xf32>
    %134 = vector.broadcast %3 : f32 to vector<8x128xf32>
    %135 = arith.mulf %57, %134 : vector<8x128xf32>
    %136 = vector.broadcast %35 : f32 to vector<8x128xf32>
    %137 = arith.addf %135, %136 : vector<8x128xf32>
    %138 = vector.broadcast %11 : f32 to vector<8x128xf32>
    %139 = arith.mulf %60, %138 : vector<8x128xf32>
    %140 = arith.addf %137, %139 : vector<8x128xf32>
    %141 = vector.broadcast %19 : f32 to vector<8x128xf32>
    %142 = arith.mulf %63, %141 : vector<8x128xf32>
    %143 = arith.addf %140, %142 : vector<8x128xf32>
    %144 = vector.broadcast %27 : f32 to vector<8x128xf32>
    %145 = arith.mulf %66, %144 : vector<8x128xf32>
    %146 = arith.addf %143, %145 : vector<8x128xf32>
    %cst_14 = arith.constant 0.000000e+00 : f32
    %147 = vector.broadcast %cst_14 : f32 to vector<8x128xf32>
    %148 = arith.maximumf %146, %147 : vector<8x128xf32>
    %149 = vector.broadcast %43 : f32 to vector<8x128xf32>
    %150 = arith.mulf %148, %149 : vector<8x128xf32>
    %151 = arith.addf %133, %150 : vector<8x128xf32>
    %152 = vector.broadcast %4 : f32 to vector<8x128xf32>
    %153 = arith.mulf %57, %152 : vector<8x128xf32>
    %154 = vector.broadcast %36 : f32 to vector<8x128xf32>
    %155 = arith.addf %153, %154 : vector<8x128xf32>
    %156 = vector.broadcast %12 : f32 to vector<8x128xf32>
    %157 = arith.mulf %60, %156 : vector<8x128xf32>
    %158 = arith.addf %155, %157 : vector<8x128xf32>
    %159 = vector.broadcast %20 : f32 to vector<8x128xf32>
    %160 = arith.mulf %63, %159 : vector<8x128xf32>
    %161 = arith.addf %158, %160 : vector<8x128xf32>
    %162 = vector.broadcast %28 : f32 to vector<8x128xf32>
    %163 = arith.mulf %66, %162 : vector<8x128xf32>
    %164 = arith.addf %161, %163 : vector<8x128xf32>
    %cst_15 = arith.constant 0.000000e+00 : f32
    %165 = vector.broadcast %cst_15 : f32 to vector<8x128xf32>
    %166 = arith.maximumf %164, %165 : vector<8x128xf32>
    %167 = vector.broadcast %44 : f32 to vector<8x128xf32>
    %168 = arith.mulf %166, %167 : vector<8x128xf32>
    %169 = arith.addf %151, %168 : vector<8x128xf32>
    %170 = vector.broadcast %5 : f32 to vector<8x128xf32>
    %171 = arith.mulf %57, %170 : vector<8x128xf32>
    %172 = vector.broadcast %37 : f32 to vector<8x128xf32>
    %173 = arith.addf %171, %172 : vector<8x128xf32>
    %174 = vector.broadcast %13 : f32 to vector<8x128xf32>
    %175 = arith.mulf %60, %174 : vector<8x128xf32>
    %176 = arith.addf %173, %175 : vector<8x128xf32>
    %177 = vector.broadcast %21 : f32 to vector<8x128xf32>
    %178 = arith.mulf %63, %177 : vector<8x128xf32>
    %179 = arith.addf %176, %178 : vector<8x128xf32>
    %180 = vector.broadcast %29 : f32 to vector<8x128xf32>
    %181 = arith.mulf %66, %180 : vector<8x128xf32>
    %182 = arith.addf %179, %181 : vector<8x128xf32>
    %cst_16 = arith.constant 0.000000e+00 : f32
    %183 = vector.broadcast %cst_16 : f32 to vector<8x128xf32>
    %184 = arith.maximumf %182, %183 : vector<8x128xf32>
    %185 = vector.broadcast %45 : f32 to vector<8x128xf32>
    %186 = arith.mulf %184, %185 : vector<8x128xf32>
    %187 = arith.addf %169, %186 : vector<8x128xf32>
    %188 = vector.broadcast %6 : f32 to vector<8x128xf32>
    %189 = arith.mulf %57, %188 : vector<8x128xf32>
    %190 = vector.broadcast %38 : f32 to vector<8x128xf32>
    %191 = arith.addf %189, %190 : vector<8x128xf32>
    %192 = vector.broadcast %14 : f32 to vector<8x128xf32>
    %193 = arith.mulf %60, %192 : vector<8x128xf32>
    %194 = arith.addf %191, %193 : vector<8x128xf32>
    %195 = vector.broadcast %22 : f32 to vector<8x128xf32>
    %196 = arith.mulf %63, %195 : vector<8x128xf32>
    %197 = arith.addf %194, %196 : vector<8x128xf32>
    %198 = vector.broadcast %30 : f32 to vector<8x128xf32>
    %199 = arith.mulf %66, %198 : vector<8x128xf32>
    %200 = arith.addf %197, %199 : vector<8x128xf32>
    %cst_17 = arith.constant 0.000000e+00 : f32
    %201 = vector.broadcast %cst_17 : f32 to vector<8x128xf32>
    %202 = arith.maximumf %200, %201 : vector<8x128xf32>
    %203 = vector.broadcast %46 : f32 to vector<8x128xf32>
    %204 = arith.mulf %202, %203 : vector<8x128xf32>
    %205 = arith.addf %187, %204 : vector<8x128xf32>
    %206 = vector.broadcast %7 : f32 to vector<8x128xf32>
    %207 = arith.mulf %57, %206 : vector<8x128xf32>
    %208 = vector.broadcast %39 : f32 to vector<8x128xf32>
    %209 = arith.addf %207, %208 : vector<8x128xf32>
    %210 = vector.broadcast %15 : f32 to vector<8x128xf32>
    %211 = arith.mulf %60, %210 : vector<8x128xf32>
    %212 = arith.addf %209, %211 : vector<8x128xf32>
    %213 = vector.broadcast %23 : f32 to vector<8x128xf32>
    %214 = arith.mulf %63, %213 : vector<8x128xf32>
    %215 = arith.addf %212, %214 : vector<8x128xf32>
    %216 = vector.broadcast %31 : f32 to vector<8x128xf32>
    %217 = arith.mulf %66, %216 : vector<8x128xf32>
    %218 = arith.addf %215, %217 : vector<8x128xf32>
    %cst_18 = arith.constant 0.000000e+00 : f32
    %219 = vector.broadcast %cst_18 : f32 to vector<8x128xf32>
    %220 = arith.maximumf %218, %219 : vector<8x128xf32>
    %221 = vector.broadcast %47 : f32 to vector<8x128xf32>
    %222 = arith.mulf %220, %221 : vector<8x128xf32>
    %223 = arith.addf %205, %222 : vector<8x128xf32>
    %c0_19 = arith.constant 0 : index
    %224 = arith.index_cast %54 : i32 to index
    %c0_20 = arith.constant 0 : index
    %225 = vector.load %arg4[%c0_19, %224, %c0_20] : memref<1x8x128xf32, #tpu.memory_space<vmem>>, vector<1x8x128xf32>
    %226 = vector.shape_cast %225 : vector<1x8x128xf32> to vector<8x128xf32>
    %227 = vector.shape_cast %223 : vector<8x128xf32> to vector<1x8x128xf32>
    tpu.vector_store %arg4[%c0_19, %224, %c0_20], %227 {strides = array<i32>} : memref<1x8x128xf32, #tpu.memory_space<vmem>>, vector<1x8x128xf32>,
    %c1_i32 = arith.constant 1 : i32
    return
  }
  func.func @transform_0(%arg0: i32, %arg1: i32) -> (i32, i32, i32, i32) {
    %c0_i32 = arith.constant 0 : i32
    %c0_i32_0 = arith.constant 0 : i32
    %c0_i32_1 = arith.constant 0 : i32
    return %arg0, %c0_i32, %arg1, %c0_i32_0 : i32, i32, i32, i32
  }
  func.func @transform_1(%arg0: i32, %arg1: i32) -> i32 {
    %c0_i32 = arith.constant 0 : i32
    %c0_i32_0 = arith.constant 0 : i32
    return %c0_i32 : i32
  }
  func.func @transform_2(%arg0: i32, %arg1: i32) -> (i32, i32, i32) {
    %c0_i32 = arith.constant 0 : i32
    %c0_i32_0 = arith.constant 0 : i32
    return %arg0, %arg1, %c0_i32 : i32, i32, i32
  }
}

</mosaic_0001>

<bundles_post_ra>
// kernel: tpu_custom_call.1
= control target key start
LH: loop header
LB: loop body
LE: loop exit
PB: predicated region body
PF: predicated region fallthrough
CT: control target
= control target key end

     0   :  { %s1195_s0 = inlined_call_operand.hbm [shape: f32[2,4,8,128], index: 0, kind: input, shape index: {}]   ;;  %s1196_s1 = inlined_call_operand.hbm [shape: f32[53], index: 1, kind: input, shape index: {}]   ;;  %s1197_s2 = inlined_call_operand.hbm [shape: f32[2,8,128], index: 2, kind: output, shape index: {}]  }
   0x1   :  { %1211 = sst [smem:[#allocation23_spill]] %s1195_s0 }
   0x2   :  { %1212 = sst [smem:[#allocation24_spill]] %s1196_s1 }
   0x3   :  { %1213 = sst [smem:[#allocation25_spill]] %s1197_s2 }
   0x4   :  { %7 = vsyncpa [#allocation3], 0 }
   0x5   :  { %9 = vsyncpa [#allocation3 + $0x1], 0 }
   0x6   :  { %10 = vsyncpa [#allocation5], 0 }
   0x7   :  { %11 = vsyncpa [#allocation4], 0 }
   0x8   :  { %13 = vsyncpa [#allocation4 + $0x1], 0  ;;  %s819_s9 = smov 0   ;;  %s821_s10 = smov 0  }
   0x9   :  { %s823_s11 = smov 0   ;;  %s825_s12 = smov 0  }
   0xa   :  { %s827_s13 = smov 0   ;;  %s829_s14 = smov 0  }
   0xb LB: > { %1214 = sst [smem:[#allocation11_spill]] %s779_s9  ;;  %s521_s15 = sadd.s32 4294967295, %s799_s14   ;;  %s799_s14 = sphi %s829_s14, %s19_s14   ;;  %s795_s13 = sphi %s827_s13, %s1247_s13   ;;  %s791_s12 = sphi %s825_s12, %s1246_s12   ;;  %s787_s11 = sphi %s823_s11, %s1245_s11   ;;  %s783_s10 = sphi %s821_s10, %s1244_s10   ;;  %s779_s9 = sphi %s819_s9, %s1243_s9  }
   0xc   : > { %1215 = sst [smem:[#allocation12_spill]] %s783_s10  ;;  %s522_s16 = sadd.s32 4294967294, %s799_s14  }
   0xd   : > { %1216 = sst [smem:[#allocation13_spill]] %s787_s11  ;;  %s40_s17 = sadd.s32 1, %s787_s11 }
   0xe   : > { %1217 = sst [smem:[#allocation14_spill]] %s791_s12  ;;  %p47_p0 = scmp.ne.s32.totalorder %s787_s11, %s783_s10 }
   0xf   : > { %1218 = sst [smem:[#allocation15_spill]] %s795_s13  ;;  %p48_p1 = scmp.eq.s32.totalorder %s799_s14, 0 }
  0x10   : > { %1219 = sst [smem:[#allocation16_spill]] %s799_s14  ;;  %p53_p2 = scmp.ne.s32.totalorder %s783_s10, %s779_s9 }
  0x11   : > { %p857_p3 = scmp.eq.s32.totalorder %s521_s15, 0  ;;  %p100_p4 = scmp.eq.s32.totalorder %s521_s15, 1 }
  0x12   : > { %p861_p5 = por %p48_p1, %p47_p0  ;;  %p106_p6 = scmp.eq.s32.totalorder %s522_s16, 1 }
  0x13   : > { %p867_p7 = por %p857_p3, %p53_p2  ;;  %p871_p8 = por %p100_p4, %p47_p0 }
  0x14   : > { %p875_p9 = por %p106_p6, %p53_p2  ;;  %p523_p10 = scmp.ge.s32.totalorder %s799_s14, 1 }
  0x15   : > { %s1223_s21 = scalar_select %p871_p8, 1, 0 }
  0x16   : > { %s1225_s22 = scalar_select %p875_p9, 1, 0 }
  0x17   : > { %1224 = sst [smem:[#allocation17_spill]] %s1223_s21  ;;  %p113_p11 = scmp.lt.s32.totalorder %s799_s14, 3 }
  0x18   : > { %1226 = sst [smem:[#allocation18_spill]] %s1225_s22  ;;  %p525_p13 = scmp.ge.s32.totalorder %s799_s14, 2 }
  0x19   : > { %s1227_s1 = sld [smem:[#allocation24_spill]]  ;;  %p884_p12 = pnand %p523_p10, %p113_p11 }
  0x1a   : > { %p614_p0 = scmp.lt.s32.totalorder %s799_s14, 2  ;;  %s31_s28 = sadd.s32 1, %s795_s13 }
  0x1b   : > { %p601_p1 = pneg %p884_p12  ;;  %p33_p6 = scmp.ge.s32.totalorder %s31_s28, 2 }
  0x1c   : > { %p894_p2 = pnand %p614_p0, %p861_p5  ;;  %s136_s29 = sand.u32 1, %s787_s11  }
  0x1d   : > { %p602_p4 = pnand %p601_p1, %p857_p3  ;;  %s801_s30 = smov [#allocation6]  }
  0x1e   : > { %s1249_s28 = smov (%p33_p6, %s31_s28), 0  ;;  %s526_s3 = sshll.u32 %s136_s29, 5 }
  0x1f   : > { %s125_s25 = sshll.u32 %s1227_s1, 4  ;;  %1230 = sst [smem:[#allocation19_spill]] %s1249_s28  ;;  %s126_s25 = int_to_ptr.hbm [resolvable:$true] %s125_s25 }
  0x20   : > { %604 = dma.hbm_to_smem (!%p602_p4), %s126_s25, 16, %s801_s30, [#allocation5]  }
  0x21   : > { %s35_s4 = ssub.s32 %s795_s13, %s1249_s28  ;;  %s592_s5 = sshll.u32 %s795_s13, 5 }
  0x22   : > { %p38_p10 = scmp.eq.s32.totalorder %s35_s4, 0  ;;  %s1231_s0 = sld [smem:[#allocation23_spill]] }
  0x23   : > { %s140_s15 = scalar_lea.vmem [#allocation2], %s526_s3  ;;  %s137_s24 = scalar_lea.sflag [#allocation3], %s136_s29 }
  0x24   : > { %s149_s16 = sshll.u32 %s140_s15, 4  ;;  %s802_s25 = smov 128   ;;  %s150_s16 = int_to_ptr.vmem [resolvable:$true] %s149_s16 }
  0x25   : > { %s913_s19 = scalar_select %p38_p10, %s787_s11, %s40_s17  }
  0x26   : > { %s803_s30 = smov 8   ;;  %161 = sbr.rel (%p884_p12) target bundleno = 133 (0x85), region = 28 }
  0x27   : > { %1232 = sst [smem:[#allocation20_spill]] %s913_s19 }
  0x28   : > { %s146_s8 = scalar_lea.hbm %s1231_s0, %s592_s5 }
  0x29   : > { %s147_s23 = sshll.u32 %s146_s8, 4  ;;  %s148_s23 = int_to_ptr.hbm [resolvable:$true] %s147_s23 }
  0x2a   : > { %608 = dma.hbm_to_vmem [thread:$0]  (!%p894_p2), %s148_s23, 512, %s150_s16, %s137_s24, %s802_s25, %s802_s25, %s803_s30  }
  0x2b   : > { %s920_s4 = sand.u32 1, %s783_s10  }
  0x2c   : > { %1233 = sst [smem:[#allocation21_spill]] %s920_s4  ;;  %s530_s3 = sshll.u32 %s920_s4, 5 }
  0x2d   : > { %s164_s17 = scalar_lea.sflag [#allocation3], %s920_s4  ;;  %s924_s5 = scalar_lea.vmem [#allocation2], %s530_s3 }
  0x2e   : > { %766 = dma.done.wait (%p867_p7), %s164_s17, 512  }
  0x2f   : > { %768 = vsyncadd (%p867_p7), %s164_s17, 4294966784 }
  0x30   : > { %770 = dma.done.wait (%p857_p3), [#allocation5], 16  }
  0x31   : > { %772 = vsyncadd (%p857_p3), [#allocation5], 4294967280 }
  0x32   : > { %178 = sfence }
  0x33   : > { %s934_s26 = sld [smem:[#allocation6]]  ;;  %v989_v0 = vld [vmem:[%s924_s5] sm:$0xff]  ;;  %v992_v1 = vld [vmem:[%s924_s5 + $0x8] sm:$0xff]  ;;  %v999_v4 = vld [vmem:[%s924_s5 + $0x10] sm:$0xff] }
  0x34   : > { %s936_s27 = sld [smem:[#allocation6 + $0x1]]  ;;  %v1032_v22 = vld [vmem:[%s924_s5 + $0x18] sm:$0xff] }
  0x35   : > { %s938_s29 = sld [smem:[#allocation6 + $0x2]] }
  0x36   : > { %s940_s6 = sld [smem:[#allocation6 + $0x3]] }
  0x37   : > { %s942_s7 = sld [smem:[#allocation6 + $0x4]] }
  0x38   : > { %s944_s8 = sld [smem:[#allocation6 + $0x5]] }
  0x39   : > { %s946_s20 = sld [smem:[#allocation6 + $0x6]]  ;;  %v271_v2 = vstv %s934_s26 }
  0x3a   : > { %s948_s15 = sld [smem:[#allocation6 + $0x7]]  ;;  %v288_v6 = vstv %s936_s27  ;;  %v272_v10 = vmul.f32 %v271_v2, %v989_v0 }
  0x3b   : > { %s950_s16 = sld [smem:[#allocation6 + $0x8]]  ;;  %v305_v9 = vstv %s938_s29  ;;  %v289_v15 = vmul.f32 %v288_v6, %v989_v0 }
  0x3c   : > { %s952_s18 = sld [smem:[#allocation6 + $0x9]]  ;;  %v322_v13 = vstv %s940_s6  ;;  %v306_v19 = vmul.f32 %v305_v9, %v989_v0 }
  0x3d   : > { %s954_s23 = sld [smem:[#allocation6 + $0xa]]  ;;  %v339_v21 = vstv %s942_s7  ;;  %v323_v26 = vmul.f32 %v322_v13, %v989_v0 }
  0x3e   : > { %s956_s24 = sld [smem:[#allocation6 + $0xb]]  ;;  %v340_v33 = vmul.f32 %v339_v21, %v989_v0  ;;  %v356_v34 = vstv %s944_s8 }
  0x3f   : > { %s958_s25 = sld [smem:[#allocation6 + $0xc]]  ;;  %v357_v45 = vmul.f32 %v356_v34, %v989_v0  ;;  %v373_v54 = vstv %s946_s20 }
  0x40   : > { %s960_s30 = sld [smem:[#allocation6 + $0xd]] }
  0x41   : > { %s962_s3 = sld [smem:[#allocation6 + $0xe]]  ;;  %v275_v3 = vstv %s950_s16 }
  0x42   : > { %s964_s17 = sld [smem:[#allocation6 + $0xf]]  ;;  %v292_v7 = vstv %s952_s18  ;;  %v276_v11 = vmul.f32 %v992_v1, %v275_v3  ;;  %v374_v3 = vmul.f32 %v373_v54, %v989_v0 }
  0x43   : > { %s548_s0 = sld [smem:[#allocation6 + $0x10]]  ;;  %v309_v12 = vstv %s954_s23  ;;  %v293_v16 = vmul.f32 %v992_v1, %v292_v7 }
  0x44   : > { %s966_s1 = sld [smem:[#allocation6 + $0x11]]  ;;  %v326_v20 = vstv %s956_s24  ;;  %v310_v25 = vmul.f32 %v992_v1, %v309_v12 }
  0x45   : > { %s968_s28 = sld [smem:[#allocation6 + $0x12]]  ;;  %v343_v30 = vstv %s958_s25  ;;  %v327_v32 = vmul.f32 %v992_v1, %v326_v20 }
  0x46   : > { %s970_s13 = sld [smem:[#allocation6 + $0x13]]  ;;  %v344_v42 = vmul.f32 %v992_v1, %v343_v30  ;;  %v360_v46 = vstv %s960_s30 }
  0x47   : > { %s972_s19 = sld [smem:[#allocation6 + $0x14]]  ;;  %v361_v56 = vmul.f32 %v992_v1, %v360_v46  ;;  %v377_v58 = vstv %s962_s3 }
  0x48   : > { %1234 = sst [smem:[#allocation22_spill]] %s964_s17  ;;  %v378_v12 = vmul.f32 %v992_v1, %v377_v58 }
  0x49   : > { %s974_s11 = sld [smem:[#allocation6 + $0x15]]  ;;  %v278_v5 = vstv %s548_s0 }
  0x4a   : > { %s976_s10 = sld [smem:[#allocation6 + $0x16]]  ;;  %v295_v8 = vstv %s966_s1  ;;  %v1016_v14 = vmul.f32 %v999_v4, %v278_v5  ;;  %v390_v5 = vstv %s948_s15 }
  0x4b   : > { %s978_s14 = sld [smem:[#allocation6 + $0x18]]  ;;  %v312_v17 = vstv %s968_s28  ;;  %v1024_v18 = vmul.f32 %v999_v4, %v295_v8  ;;  %v391_v20 = vmul.f32 %v390_v5, %v989_v0 }
  0x4c   : > { %s980_s22 = sld [smem:[#allocation6 + $0x19]]  ;;  %v1042_v28 = vmul.f32 %v999_v4, %v312_v17  ;;  %v329_v29 = vstv %s970_s13 }
  0x4d   : > { %s982_s9 = sld [smem:[#allocation6 + $0x1a]]  ;;  %v346_v38 = vstv %s972_s19  ;;  %v330_v41 = vmul.f32 %v999_v4, %v329_v29 }
  0x4e   : > { %s984_s21 = sld [smem:[#allocation6 + $0x20]]  ;;  %v1077_v49 = vmul.f32 %v999_v4, %v346_v38 }
  0x4f   : > { %s986_s2 = sld [smem:[#allocation6 + $0x21]]  ;;  %v363_v53 = vstv %s974_s11 }
  0x50   : > { %s996_s12 = sld [smem:[#allocation6 + $0x1b]]  ;;  %v380_v62 = vstv %s976_s10  ;;  %v364_v2 = vmul.f32 %v999_v4, %v363_v53 }
  0x51   : > { %s1003_s4 = sld [smem:[#allocation6 + $0x22]]  ;;  %v281_v24 = vstv %s978_s14  ;;  %v381_v13 = vmul.f32 %v999_v4, %v380_v62 }
  0x52   : > { %s1007_s17 = sld [smem:[#allocation6 + $0x1c]]  ;;  %v298_v27 = vstv %s980_s22  ;;  %v282_v36 = vmul.f32 %v1032_v22, %v281_v24 }
  0x53   : > { %s1013_s0 = sld [smem:[#allocation6 + $0x23]]  ;;  %v315_v37 = vstv %s982_s9  ;;  %v1060_v39 = vmul.f32 %v1032_v22, %v298_v27 }
  0x54   : > { %s1021_s1 = sld [smem:[#allocation6 + $0x17]]  ;;  %v273_v23 = vstv %s984_s21  ;;  %v1073_v47 = vmul.f32 %v1032_v22, %v315_v37 }
  0x55   : > { %s1029_s26 = sld [smem:[#allocation6 + $0x1d]]  ;;  %v290_v31 = vstv %s986_s2  ;;  %v274_v35 = vadd.f32 %v273_v23, %v272_v10 }
  0x56   : > { %s1038_s28 = sld [smem:[#allocation6 + $0x24]]  ;;  %v291_v43 = vadd.f32 %v290_v31, %v289_v15  ;;  %v332_v44 = vstv %s996_s12 }
  0x57   : > { %s1046_s27 = sld [smem:[#allocation6 + $0x1e]]  ;;  %v307_v40 = vstv %s1003_s4  ;;  %v277_v51 = vadd.f32 %v276_v11, %v274_v35  ;;  %v333_v55 = vmul.f32 %v1032_v22, %v332_v44 }
  0x58   : > { %s1052_s14 = sld [smem:[#allocation6 + $0x25]]  ;;  %v349_v50 = vstv %s1007_s17  ;;  %v308_v52 = vadd.f32 %v307_v40, %v306_v19  ;;  %v294_v59 = vadd.f32 %v293_v16, %v291_v43 }
  0x59   : > { %s1057_s13 = sld [smem:[#allocation6 + $0x1f]]  ;;  %v324_v48 = vstv %s1013_s0  ;;  %v1097_v63 = vmul.f32 %v1032_v22, %v349_v50  ;;  %v280_v6 = vadd.f32 %v1016_v14, %v277_v51 }
  0x5a   : > { %s1065_s2 = sld [smem:[#allocation6 + $0x26]]  ;;  %v325_v60 = vadd.f32 %v324_v48, %v323_v26  ;;  %v311_v7 = vadd.f32 %v310_v25, %v308_v52  ;;  %v297_v14 = vadd.f32 %v1024_v18, %v294_v59  ;;  %v397_v23 = vstv %s1021_s1 }
  0x5b   : > { %s1070_s9 = sld [smem:[#allocation6 + $0x27]]  ;;  %v366_v57 = vstv %s1029_s26  ;;  %v283_v25 = vadd.f32 %v282_v36, %v280_v6  ;;  %v398_v35 = vmul.f32 %v999_v4, %v397_v23 }
  0x5c   : > { %s1080_s21 = sld [smem:[#allocation6 + $0x28]]  ;;  %v341_v61 = vstv %s1038_s28  ;;  %v367_v11 = vmul.f32 %v1032_v22, %v366_v57  ;;  %v328_v15 = vadd.f32 %v327_v32, %v325_v60  ;;  %v314_v26 = vadd.f32 %v1042_v28, %v311_v7 }
  0x5d   : > { %s1084_s12 = sld [smem:[#allocation6 + $0x29]]  ;;  %v342_v10 = vadd.f32 %v341_v61, %v340_v33  ;;  %v383_v17 = vstv %s1046_s27  ;;  %v300_v33 = vadd.f32 %v1060_v39, %v297_v14 }
  0x5e   : > { %s1235_s22 = sld [smem:[#allocation22_spill]]  ;;  %v358_v8 = vstv %s1052_s14  ;;  %v331_v34 = vadd.f32 %v330_v41, %v328_v15  ;;  %v317_v43 = vadd.f32 %v1073_v47, %v314_v26 }
  0x5f   : > { %s1090_s19 = sld [smem:[#allocation6 + $0x30]]  ;;  %v359_v19 = vadd.f32 %v358_v8, %v357_v45  ;;  %v345_v30 = vadd.f32 %v344_v42, %v342_v10  ;;  %v284_v42 = vmax.f32 %v283_v25, 0.0  ;;  %v400_v50 = vstv %s1057_s13 }
  0x60   : > { %s1094_s4 = sld [smem:[#allocation6 + $0x31]]  ;;  %v375_v16 = vstv %s1065_s2  ;;  %v334_v48 = vadd.f32 %v333_v55, %v331_v34  ;;  %v401_v60 = vmul.f32 %v1032_v22, %v400_v50 }
  0x61   : > { %s1102_s11 = sld [smem:[#allocation6 + $0x32]]  ;;  %v392_v27 = vstv %s1070_s9  ;;  %v376_v31 = vadd.f32 %v375_v16, %v374_v3  ;;  %v362_v37 = vadd.f32 %v361_v56, %v359_v19  ;;  %v348_v41 = vadd.f32 %v1077_v49, %v345_v30 }
  0x62   : > { %s1107_s10 = sld [smem:[#allocation6 + $0x33]]  ;;  %v285_v28 = vstv %s1080_s21  ;;  %v393_v38 = vadd.f32 %v392_v27, %v391_v20  ;;  %v318_v56 = vmax.f32 %v317_v43, 0.0  ;;  %v335_v62 = vmax.f32 %v334_v48, 0.0 }
  0x63   : > { %s1112_s5 = sld [smem:[#allocation6 + $0x34]]  ;;  %v379_v45 = vadd.f32 %v378_v12, %v376_v31  ;;  %v302_v46 = vstv %s1084_s12  ;;  %v365_v53 = vadd.f32 %v364_v2, %v362_v37  ;;  %v286_v47 = vmul.f32 %v285_v28, %v284_v42 }
  0x64   : > { %v394_v9 = vstv %s1235_s22  ;;  %s1125_s29 = sld [smem:[#allocation6 + $0x2a]]  ;;  %v351_v57 = vadd.f32 %v1097_v63, %v348_v41 }
  0x65   : > { %v395_v21 = vmul.f32 %v992_v1, %v394_v9  ;;  %v258_v24 = vstv %s1090_s19  ;;  %s1132_s6 = sld [smem:[#allocation6 + $0x2b]]  ;;  %v382_v58 = vadd.f32 %v381_v13, %v379_v45  ;;  %v368_v2 = vadd.f32 %v367_v11, %v365_v53 }
  0x66   : > { %v259_v18 = vmul.f32 %v258_v24, %v989_v0  ;;  %v262_v29 = vstv %s1094_s4  ;;  %s1139_s7 = sld [smem:[#allocation6 + $0x2c]]  ;;  %v352_v7 = vmax.f32 %v351_v57, 0.0 }
  0x67   : > { %v265_v32 = vstv %s1102_s11  ;;  %v263_v36 = vmul.f32 %v992_v1, %v262_v29  ;;  %v301_v1 = vmax.f32 %v300_v33, 0.0  ;;  %v396_v54 = vadd.f32 %v395_v21, %v393_v38  ;;  %s1144_s8 = sld [smem:[#allocation6 + $0x2d]] }
  0x68   : > { %v268_v40 = vstv %s1107_s10  ;;  %v266_v39 = vmul.f32 %v999_v4, %v265_v32  ;;  %v384_v4 = vmul.f32 %v1032_v22, %v383_v17  ;;  %s1148_s20 = sld [smem:[#allocation6 + $0x2e]]  ;;  %v369_v13 = vmax.f32 %v368_v2, 0.0 }
  0x69   : > { %v260_v0 = vstv %s1112_s5  ;;  %v269_v52 = vmul.f32 %v1032_v22, %v268_v40  ;;  %v303_v55 = vmul.f32 %v302_v46, %v301_v1  ;;  %v399_v3 = vadd.f32 %v398_v35, %v396_v54  ;;  %s1236_s15 = sld [smem:[#allocation21_spill]] }
  0x6a   : > { %v261_v44 = vadd.f32 %v260_v0, %v259_v18  ;;  %v319_v59 = vstv %s1125_s29  ;;  %s579_s16 = sld [smem:[#allocation6 + $0x2f]]  ;;  %v385_v8 = vadd.f32 %v384_v4, %v382_v58 }
  0x6b   : > { %v336_v5 = vstv %s1132_s6  ;;  %s1237_s18 = sld [smem:[#allocation14_spill]]  ;;  %v320_v63 = vmul.f32 %v319_v59, %v318_v56  ;;  %v402_v14 = vadd.f32 %v401_v60, %v399_v3 }
  0x6c   : > { %v264_v51 = vadd.f32 %v263_v36, %v261_v44  ;;  %v353_v9 = vstv %s1139_s7  ;;  %v337_v12 = vmul.f32 %v336_v5, %v335_v62  ;;  %v386_v17 = vmax.f32 %v385_v8, 0.0  ;;  %s1238_s3 = sld [smem:[#allocation25_spill]] }
  0x6d   : > { %v370_v22 = vstv %s1144_s8  ;;  %v354_v16 = vmul.f32 %v353_v9, %v352_v7  ;;  %v403_v21 = vmax.f32 %v402_v14, 0.0 }
  0x6e   : > { %v267_v49 = vadd.f32 %v266_v39, %v264_v51  ;;  %v387_v11 = vstv %s1148_s20  ;;  %v371_v20 = vmul.f32 %v370_v22, %v369_v13 }
  0x6f   : > { %s532_s23 = sshll.u32 %s1236_s15, 3  ;;  %v388_v25 = vmul.f32 %v387_v11, %v386_v17  ;;  %s409_s27 = scalar_lea.sflag [#allocation4], %s1236_s15 }
  0x70   : > { %v270_v61 = vadd.f32 %v269_v52, %v267_v49  ;;  %v404_v23 = vstv %s579_s16  ;;  %s194_s1 = scalar_lea.vmem [#allocation7], %s532_s23 }
  0x71   : > { %s589_s24 = sshll.u32 %s1237_s18, 3  ;;  %v405_v27 = vmul.f32 %v404_v23, %v403_v21  ;;  %s422_s26 = sshll.u32 %s194_s1, 4  ;;  %s423_s26 = int_to_ptr.vmem [resolvable:$true] %s422_s26 }
  0x72   : > { %v287_v6 = vadd.f32 %v286_v47, %v270_v61  ;;  %s420_s17 = scalar_lea.hbm %s1238_s3, %s589_s24  ;;  %s733_s21 = scalar_lea.hbm %s1238_s3, 16 }
  0x73   : > { %s424_s28 = sshll.u32 %s420_s17, 4  ;;  %s425_s28 = int_to_ptr.hbm [resolvable:$true] %s424_s28 }
  0x74   : > { %v304_v10 = vadd.f32 %v303_v55, %v287_v6  ;;  %s727_s14 = sshra.s32 %s425_s28, 4  ;;  %s728_s14 = int_to_ptr.hbm [resolvable:$true] %s727_s14 }
  0x75   : > { %s729_s13 = scalar_lea.hbm %s728_s14, 8  ;;  %p734_p11 = scmp.lt.s32.totalorder %s728_s14, %s1238_s3 }
  0x76   : > { %v321_v15 = vadd.f32 %v320_v63, %v304_v10  ;;  %p730_p3 = scmp.ne.s32.totalorder %s728_s14, %s729_s13  ;;  %p735_p12 = scmp.lt.s32.totalorder %s733_s21, %s729_s13 }
  0x78   : > { %v338_v19 = vadd.f32 %v337_v12, %v321_v15  ;;  %p731_p5 = pnand %p730_p3, %p871_p8  ;;  %p736_p0 = por %p735_p12, %p734_p11 }
  0x7a   : > { %v355_v24 = vadd.f32 %v354_v16, %v338_v19  ;;  %p732_p7 = pneg %p731_p5 }
  0x7c   : > { %v372_v26 = vadd.f32 %v371_v20, %v355_v24  ;;  %p737_p1 = pnand %p736_p0, %p732_p7 }
  0x7e   : > { %v389_v18 = vadd.f32 %v388_v25, %v372_v26 }
  0x80   : > { %v406_v29 = vadd.f32 %v405_v27, %v389_v18 }
  0x82   : > { %407 = vst [vmem:[%s194_s1] sm:$0xff] %v406_v29 }
  0x83   : > { %740 = shalt.err (!%p737_p1)
}
  0x84   : > { %599 = dma.vmem_to_hbm [thread:$0]  (%p871_p8), %s423_s26, 128, %s425_s28, %s409_s27  }
  0x85 PF: > { %s1240_s19 = sld [smem:[#allocation11_spill]]  ;;  %p610_p2 = pnand %p525_p13, %p875_p9 }
  0x86   : > { %s1242_s11 = sld [smem:[#allocation16_spill]] }
  0x87   : > { %p611_p4 = pneg %p610_p2 }
  0x8b   : > { %s436_s10 = sand.u32 1, %s1240_s19  }
  0x8c   : > { %s437_s5 = scalar_lea.sflag [#allocation4], %s436_s10 }
  0x8d   : > { %774 = dma.done.wait (%p611_p4), %s437_s5, 128  }
  0x8e   : > { %776 = vsyncadd (%p611_p4), %s437_s5, 4294967168  ;;  %s19_s14 = sadd.s32 1, %s1242_s11   ;;  %s1243_s9 = sld [smem:[#allocation12_spill]] }
  0x8f   : > { %p16_p6 = scmp.ge.s32.totalorder %s19_s14, 4   ;;  %s1244_s10 = sld [smem:[#allocation13_spill]] }
  0x90   : > { %s1245_s11 = sld [smem:[#allocation20_spill]] }
  0x91   : > { %s1246_s12 = sld [smem:[#allocation15_spill]]  ;;  %18 = sbr.rel (!%p16_p6) target bundleno = 11 (0xb), region = 81 }
  0x92   : > { %s1247_s13 = sld [smem:[#allocation19_spill]] }
  0x96   :  { %443 = vsyncpa [#allocation3], 1 }
  0x97   :  { %445 = vsyncpa [#allocation3 + $0x1], 1 }
  0x98   :  { %446 = vsyncpa [#allocation4], 1 }
  0x99   :  { %448 = vsyncpa [#allocation4 + $0x1], 1 }
  0x9a   :  { %449 = vsyncpa [#allocation5], 1 }
  0x9b   :  { %451 = vsyncpa [#allocation5 + $0x1], 1 }

</bundles_post_ra>
